<compile_context>
chip_gen: v6e
topology: v6e:2x2x1
jax: 0.10.0
libtpu: 0.0.40
codegen_flags: <defaults>
</compile_context>

<pallas_src>
import functools

import jax
import jax.numpy as jnp
from jax.experimental import pallas as pl
from jax.experimental.pallas import tpu as pltpu

PACK = 8  # rows folded into the lane dim (one sublane group)


def _round_up(x, m):
    return ((x + m - 1) // m) * m


def _block_diag(block, n):
    """Block-diagonal of n copies of `block` (dtype-preserving, static n)."""
    r, c = block.shape
    out = jnp.zeros((n * r, n * c), block.dtype)
    for j in range(n):
        out = out.at[j * r:(j + 1) * r, j * c:(j + 1) * c].set(block)
    return out


def imunet_kernel(x_ref, w1_ref, b1_ref, w2_ref, b2_ref, out_ref):
    # x_ref : (tp, PACK*2F)       packed activations (lane-dense-ish, 96 lanes)
    # w1_ref: (PACK*2F, PACK*2E)  block-diag fc1 (shared weight, both streams)
    # w2_ref: (PACK*2E, PACK*O)   block-diag compress
    h = jnp.dot(x_ref[...], w1_ref[...], preferred_element_type=jnp.float32)
    h = jnp.maximum(h + b1_ref[...], 0.0)
    # Cast the compress LHS to the weight dtype so bf16 runs on the native
    # bf16 MXU path (accumulation stays f32 via preferred_element_type).
    h = h.astype(w2_ref.dtype)
    out = jnp.dot(h, w2_ref[...], preferred_element_type=jnp.float32) + b2_ref[...]
    # (tp, PACK*O) = (tp, 128) for O=16 -> unmasked, lane-dense stores.
    out_ref[...] = jnp.maximum(out, 0.0).astype(out_ref.dtype)


def _pack_weights(params, compute_dtype):
    """Build the packed block-diagonal weights / tiled biases (done once)."""
    w1 = params["w1"].astype(compute_dtype)   # (F, E)
    b1 = params["b1"].astype(jnp.float32)     # (E,)
    w2 = params["w2"].astype(compute_dtype)   # (2E, O)
    b2 = params["b2"].astype(jnp.float32)     # (O,)
    F, E = w1.shape

    # Per-row block diag implementing concat(lin @ w1, gyro @ w1) on the
    # feature-concatenated input [lin | gyro].
    w1c = jnp.zeros((2 * F, 2 * E), compute_dtype)
    w1c = w1c.at[:F, :E].set(w1).at[F:, E:].set(w1)
    b1c = jnp.concatenate([b1, b1])           # (2E,)

    # Fold PACK rows into lanes: block-diag of PACK copies.
    W1 = _block_diag(w1c, PACK)               # (PACK*2F, PACK*2E)
    W2 = _block_diag(w2, PACK)                # (PACK*2E, PACK*O)
    B1 = jnp.tile(b1c, PACK).reshape(1, -1)   # (1, PACK*2E) f32
    B2 = jnp.tile(b2, PACK).reshape(1, -1)    # (1, PACK*O)  f32
    return W1, B1, W2, B2


def imunet_forward(imu_linear, imu_gyro, params, *,
                   compute_dtype=jnp.bfloat16, out_dtype=jnp.float32, tp=None):
    """imu_linear, imu_gyro: (B, T, F). Returns (B, T, out_features)."""
    B, T, F = imu_linear.shape
    assert imu_gyro.shape == (B, T, F)
    E = params["w1"].shape[1]
    O = params["w2"].shape[1]
    M = B * T

    W1, B1, W2, B2 = _pack_weights(params, compute_dtype)

    # Tile selection over packed rows (each packed row = PACK original rows).
    rows = pl.cdiv(M, PACK)
    tp_cap = 512  # per-step buffers stay small even on v7x (64 MiB VMEM)
    if tp is None:
        if rows <= PACK:
            tp = PACK
        else:
            # Even number of grid steps (>= 2) so v7x's two TensorCores both
            # get work; many steps only when rows exceed 2 * tp_cap.
            steps = max(2, 2 * pl.cdiv(rows, 2 * tp_cap))
            tp = _round_up(pl.cdiv(rows, steps), PACK)
    tp = max(PACK, _round_up(tp, PACK))
    grid = pl.cdiv(rows, tp)
    rows_pad = grid * tp
    M_pad = rows_pad * PACK

    # Single merged activation stream.  concat + pad + reshape fuse into the
    # one packing copy (no standalone jnp.pad pass over both streams).
    x = jnp.concatenate(
        [imu_linear.reshape(M, F).astype(compute_dtype),
         imu_gyro.reshape(M, F).astype(compute_dtype)], axis=1)   # (M, 2F)
    if M_pad != M:
        x = jnp.pad(x, ((0, M_pad - M), (0, 0)))
    xp = x.reshape(rows_pad, PACK * 2 * F)

    # (pl.Buffered(3) on the activation spec is a further option if DMA
    #  latency is still exposed on v5e/v6e; per-step payload is already large.)
    out = pl.pallas_call(
        imunet_kernel,
        out_shape=jax.ShapeDtypeStruct((rows_pad, PACK * O), out_dtype),
        grid_spec=pltpu.PrefetchScalarGridSpec(
            num_scalar_prefetch=0,
            grid=(grid,),
            in_specs=[
                pl.BlockSpec((tp, PACK * 2 * F), lambda i: (i, 0)),        # x
                pl.BlockSpec((PACK * 2 * F, PACK * 2 * E), lambda i: (0, 0)),  # W1
                pl.BlockSpec((1, PACK * 2 * E), lambda i: (0, 0)),         # b1
                pl.BlockSpec((PACK * 2 * E, PACK * O), lambda i: (0, 0)),  # W2
                pl.BlockSpec((1, PACK * O), lambda i: (0, 0)),             # b2
            ],
            out_specs=pl.BlockSpec((tp, PACK * O), lambda i: (i, 0)),
        ),
        compiler_params=pltpu.CompilerParams(
            dimension_semantics=("parallel",)),
    )(xp, W1, B1, W2, B2)

    # Free un-pack: (rows_pad, PACK*O) -> (M_pad, O) -> (B, T, O).
    return out.reshape(M_pad, O)[:M].reshape(B, T, O)


def imunet_reference(imu_linear, imu_gyro, params):
    """Pure-JAX reference mirroring the PyTorch forward exactly."""
    w1, b1, w2, b2 = params["w1"], params["b1"], params["w2"], params["b2"]
    lin = jax.nn.relu(imu_linear @ w1 + b1)
    gyro = jax.nn.relu(imu_gyro @ w1 + b1)
    concat = jnp.concatenate((lin, gyro), axis=2)
    return jax.nn.relu(concat @ w2 + b2)


def init_params(key, in_features, expansion_size, out_features):
    """Deterministic synthetic parameters (shapes match LazyLinear after first call)."""
    k1, k2, k3, k4 = jax.random.split(key, 4)
    bound1 = 1.0 / (in_features ** 0.5)
    bound2 = 1.0 / ((2 * expansion_size) ** 0.5)
    return {
        "w1": jax.random.uniform(k1, (in_features, expansion_size),
                                 jnp.float32, -bound1, bound1),
        "b1": jax.random.uniform(k2, (expansion_size,),
                                 jnp.float32, -bound1, bound1),
        "w2": jax.random.uniform(k3, (2 * expansion_size, out_features),
                                 jnp.float32, -bound2, bound2),
        "b2": jax.random.uniform(k4, (out_features,),
                                 jnp.float32, -bound2, bound2),
    }


if __name__ == "__main__":
    B, T, F = 2, 8, 6          # batch, sequence length, IMU feature dim
    expansion_size = 32
    out_features = 16

    key = jax.random.PRNGKey(0)
    k_lin, k_gyro, k_params, k_lin2, k_gyro2 = jax.random.split(key, 5)
    imu_linear = jax.random.normal(k_lin, (B, T, F), jnp.float32)
    imu_gyro = jax.random.normal(k_gyro, (B, T, F), jnp.float32)
    params = init_params(k_params, F, expansion_size, out_features)

    ref = imunet_reference(imu_linear, imu_gyro, params)

    fwd_f32 = jax.jit(functools.partial(imunet_forward, compute_dtype=jnp.float32))
    fwd_bf16 = jax.jit(imunet_forward)   # default: bf16 compute, f32 output

    # 1) f32 path (exact vs reference).
    out_f32 = jax.block_until_ready(fwd_f32(imu_linear, imu_gyro, params))
    assert out_f32.shape == (B, T, out_features)
    assert jnp.allclose(out_f32, ref, atol=1e-5, rtol=1e-5), "f32 mismatch vs reference"

    # 2) default bf16 path (halved activation/weight HBM traffic, f32 accumulate).
    out_bf = jax.block_until_ready(fwd_bf16(imu_linear, imu_gyro, params))
    assert jnp.allclose(out_bf, ref, atol=5e-2, rtol=5e-2), "bf16 mismatch"

    # 3) Shape NOT a multiple of 8 rows -> exercises the fused padding path.
    B2, T2 = 3, 7
    lin_b = jax.random.normal(k_lin2, (B2, T2, F), jnp.float32)
    gyro_b = jax.random.normal(k_gyro2, (B2, T2, F), jnp.float32)
    out_b = jax.block_until_ready(fwd_f32(lin_b, gyro_b, params))
    ref_b = imunet_reference(lin_b, gyro_b, params)
    assert out_b.shape == (B2, T2, out_features)
    assert jnp.allclose(out_b, ref_b, atol=1e-5, rtol=1e-5), "padded-shape mismatch"

    # 4) Larger shape -> exercises an even multi-step grid (v7x core balance).
    B3, T3 = 4, 64
    lin_c = jax.random.normal(k_lin, (B3, T3, F), jnp.float32)
    gyro_c = jax.random.normal(k_gyro, (B3, T3, F), jnp.float32)
    out_c = jax.block_until_ready(fwd_f32(lin_c, gyro_c, params))
    ref_c = imunet_reference(lin_c, gyro_c, params)
    assert out_c.shape == (B3, T3, out_features)
    assert jnp.allclose(out_c, ref_c, atol=1e-5, rtol=1e-5), "multi-step grid mismatch"

    print("KERNEL_OK")
</pallas_src>

<mosaic_0001>
module attributes {stable_mosaic.version = 11 : i64} {
  func.func @imunet_kernel(%arg0: i32, %arg1: memref<8x96xf32, #tpu.memory_space<vmem>>, %arg2: memref<96x512xf32, #tpu.memory_space<vmem>>, %arg3: memref<1x512xf32, #tpu.memory_space<vmem>>, %arg4: memref<512x128xf32, #tpu.memory_space<vmem>>, %arg5: memref<1x128xf32, #tpu.memory_space<vmem>>, %arg6: memref<8x128xf32, #tpu.memory_space<vmem>>) attributes {dimension_semantics = [#tpu.dimension_semantics<parallel>], iteration_bounds = array<i64: 1>, scalar_prefetch = 0 : i64, scratch_operands = 0 : i64, tpu.core_type = #tpu.core_type<tc>, window_params = [{transform_indices = @transform_0, window_bounds = array<i64: 8, 96>}, {pipeline_mode = #tpu.pipeline_mode<synchronous>, transform_indices = @transform_1, window_bounds = array<i64: 96, 512>}, {pipeline_mode = #tpu.pipeline_mode<synchronous>, transform_indices = @transform_2, window_bounds = array<i64: 1, 512>}, {pipeline_mode = #tpu.pipeline_mode<synchronous>, transform_indices = @transform_3, window_bounds = array<i64: 512, 128>}, {pipeline_mode = #tpu.pipeline_mode<synchronous>, transform_indices = @transform_4, window_bounds = array<i64: 1, 128>}, {transform_indices = @transform_5, window_bounds = array<i64: 8, 128>}]} {
    %c0 = arith.constant 0 : index
    %c0_0 = arith.constant 0 : index
    %0 = vector.load %arg1[%c0, %c0_0] : memref<8x96xf32, #tpu.memory_space<vmem>>, vector<8x96xf32>
    %c0_1 = arith.constant 0 : index
    %c0_2 = arith.constant 0 : index
    %1 = vector.load %arg2[%c0_1, %c0_2] : memref<96x512xf32, #tpu.memory_space<vmem>>, vector<96x512xf32>
    %cst = arith.constant dense<0.000000e+00> : vector<8x512xf32>
    %2 = tpu.matmul %0, %1, %cst {dimension_numbers = #tpu.dot_dimension_numbers<[1], [0], [0], [1], [0, 0, 1, 1], [], []>} : vector<8x96xf32>, vector<96x512xf32>, vector<8x512xf32> -> vector<8x512xf32>
    %c0_3 = arith.constant 0 : index
    %c0_4 = arith.constant 0 : index
    %3 = vector.load %arg3[%c0_3, %c0_4] : memref<1x512xf32, #tpu.memory_space<vmem>>, vector<1x512xf32>
    %4 = vector.broadcast %3 : vector<1x512xf32> to vector<8x512xf32>
    %5 = arith.addf %2, %4 : vector<8x512xf32>
    %cst_5 = arith.constant 0.000000e+00 : f32
    %6 = vector.broadcast %cst_5 : f32 to vector<8x512xf32>
    %7 = arith.maximumf %5, %6 : vector<8x512xf32>
    %c0_6 = arith.constant 0 : index
    %c0_7 = arith.constant 0 : index
    %8 = vector.load %arg4[%c0_6, %c0_7] : memref<512x128xf32, #tpu.memory_space<vmem>>, vector<512x128xf32>
    %cst_8 = arith.constant dense<0.000000e+00> : vector<8x128xf32>
    %9 = tpu.matmul %7, %8, %cst_8 {dimension_numbers = #tpu.dot_dimension_numbers<[1], [0], [0], [1], [0, 0, 1, 1], [], []>} : vector<8x512xf32>, vector<512x128xf32>, vector<8x128xf32> -> vector<8x128xf32>
    %c0_9 = arith.constant 0 : index
    %c0_10 = arith.constant 0 : index
    %10 = vector.load %arg5[%c0_9, %c0_10] : memref<1x128xf32, #tpu.memory_space<vmem>>, vector<1x128xf32>
    %11 = vector.broadcast %10 : vector<1x128xf32> to vector<8x128xf32>
    %12 = arith.addf %9, %11 : vector<8x128xf32>
    %cst_11 = arith.constant 0.000000e+00 : f32
    %13 = vector.broadcast %cst_11 : f32 to vector<8x128xf32>
    %14 = arith.maximumf %12, %13 : vector<8x128xf32>
    %c0_12 = arith.constant 0 : index
    %c0_13 = arith.constant 0 : index
    %15 = vector.load %arg6[%c0_12, %c0_13] : memref<8x128xf32, #tpu.memory_space<vmem>>, vector<8x128xf32>
    tpu.vector_store %arg6[%c0_12, %c0_13], %14 {strides = array<i32>} : memref<8x128xf32, #tpu.memory_space<vmem>>, vector<8x128xf32>,
    return
  }
  func.func @transform_0(%arg0: i32) -> (i32, i32) {
    %c0_i32 = arith.constant 0 : i32
    %c0_i32_0 = arith.constant 0 : i32
    return %arg0, %c0_i32 : i32, i32
  }
  func.func @transform_1(%arg0: i32) -> (i32, i32) {
    %c0_i32 = arith.constant 0 : i32
    %c0_i32_0 = arith.constant 0 : i32
    %c0_i32_1 = arith.constant 0 : i32
    return %c0_i32, %c0_i32_0 : i32, i32
  }
  func.func @transform_2(%arg0: i32) -> (i32, i32) {
    %c0_i32 = arith.constant 0 : i32
    %c0_i32_0 = arith.constant 0 : i32
    %c0_i32_1 = arith.constant 0 : i32
    return %c0_i32, %c0_i32_0 : i32, i32
  }
  func.func @transform_3(%arg0: i32) -> (i32, i32) {
    %c0_i32 = arith.constant 0 : i32
    %c0_i32_0 = arith.constant 0 : i32
    %c0_i32_1 = arith.constant 0 : i32
    return %c0_i32, %c0_i32_0 : i32, i32
  }
  func.func @transform_4(%arg0: i32) -> (i32, i32) {
    %c0_i32 = arith.constant 0 : i32
    %c0_i32_0 = arith.constant 0 : i32
    %c0_i32_1 = arith.constant 0 : i32
    return %c0_i32, %c0_i32_0 : i32, i32
  }
  func.func @transform_5(%arg0: i32) -> (i32, i32) {
    %c0_i32 = arith.constant 0 : i32
    %c0_i32_0 = arith.constant 0 : i32
    return %arg0, %c0_i32 : i32, i32
  }
}

</mosaic_0001>

<bundles_post_ra>
// kernel: tile.13
= control target key start
LH: loop header
LB: loop body
LE: loop exit
PB: predicated region body
PF: predicated region fallthrough
CT: control target
= control target key end

     0   :  { %s22_s0 = inlined_call_operand.vmem [shape: f32[64], index: 0, kind: input, shape index: {}]   ;;  %s23_s1 = inlined_call_operand.vmem [shape: f32[8,64], index: 1, kind: output, shape index: {}]  }
   0x1   :  { %v4_v0 = vld [vmem:[%s22_s0] ss:$0 sm:$0xff] }
   0x2   :  { %5 = vst [vmem:[%s23_s1] sm:$0xff] %v4_v0 }

// kernel: tile.14
= control target key start
LH: loop header
LB: loop body
LE: loop exit
PB: predicated region body
PF: predicated region fallthrough
CT: control target
= control target key end

     0   :  { %vm3_vm0 = vcmask 523264   ;;  %s46_s8 = smov 64   ;;  %vm9_vm1 = vcmask 1048064   ;;  %s75_s0 = inlined_call_operand.vmem [shape: f32[8,64], index: 0, kind: input, shape index: {}]   ;;  %s76_s1 = inlined_call_operand.vmem [shape: f32[1,512], index: 1, kind: output, shape index: {}]  }
   0x1   :  { %v41_v0 = vld [vmem:[%s75_s0 + $0x1] ss:$2 sm:$0xf]   ;;  %v2_v1 = vld [vmem:[%s75_s0] ss:$2 sm:$0xf]  }
   0x2   :  { %7 = vrot.lane.b32.xlu0 %v41_v0, %s46_s8  ;;  %4 = vst.msk [vmem:[#allocation0] ss:$8 sm:$0xf] %vm3_vm0, %v2_v1  }
  0x74   :  { %v8_v2 = vpop.permute.xlu0 %7  }
  0x75   :  { %10 = vst.msk [vmem:[#allocation0] ss:$8 sm:$0xf] %vm9_vm1, %v8_v2  }
  0x7c   :  { %v15_v3 = vld [vmem:[#allocation0] sm:$0x1]  ;;  %v20_v4 = vld [vmem:[#allocation0 + $0x8] sm:$0x1]  ;;  %v26_v5 = vld [vmem:[#allocation0 + $0x10] sm:$0x1] }
  0x7d   :  { %18 = vst [vmem:[%s76_s1] sm:$0x1] %v15_v3  ;;  %42 = vst [vmem:[%s76_s1 + $0x1] sm:$0x1] %v20_v4  ;;  %v33_v6 = vld [vmem:[#allocation0 + $0x18] sm:$0x1] }
  0x7e   :  { %43 = vst [vmem:[%s76_s1 + $0x2] sm:$0x1] %v26_v5  ;;  %44 = vst [vmem:[%s76_s1 + $0x3] sm:$0x1] %v33_v6 }

// kernel: tile.18
= control target key start
LH: loop header
LB: loop body
LE: loop exit
PB: predicated region body
PF: predicated region fallthrough
CT: control target
= control target key end

     0   :  { %s22_s0 = inlined_call_operand.vmem [shape: f32[16], index: 0, kind: input, shape index: {}]   ;;  %s23_s1 = inlined_call_operand.vmem [shape: f32[8,16], index: 1, kind: output, shape index: {}]  }
   0x1   :  { %v4_v0 = vld [vmem:[%s22_s0] ss:$0 sm:$0xff] }
   0x2   :  { %5 = vst [vmem:[%s23_s1] sm:$0xff] %v4_v0 }

// kernel: tile.19
= control target key start
LH: loop header
LB: loop body
LE: loop exit
PB: predicated region body
PF: predicated region fallthrough
CT: control target
= control target key end

     0   :  { %s69_s10 = smov 112   ;;  %s70_s11 = smov 80   ;;  %vm3_vm0 = vcmask 130048   ;;  %vm9_vm1 = vcmask 1048448   ;;  %vm15_vm2 = vcmask 917248   ;;  %vm21_vm3 = vcmask 786048   ;;  %s113_s0 = inlined_call_operand.vmem [shape: f32[8,16], index: 0, kind: input, shape index: {}]   ;;  %s114_s1 = inlined_call_operand.vmem [shape: f32[1,128], index: 1, kind: output, shape index: {}]  }
   0x1   :  { %v55_v0 = vld [vmem:[%s113_s0 + $0x7] sm:$0x1]   ;;  %v57_v1 = vld [vmem:[%s113_s0 + $0x5] sm:$0x1]   ;;  %v56_v2 = vld [vmem:[%s113_s0 + $0x6] sm:$0x1]  }
   0x2   :  { %7 = vrot.lane.b32.xlu0 %v55_v0, %s69_s10  ;;  %19 = vrot.lane.b32.xlu1 %v57_v1, %s70_s11  ;;  %v58_v3 = vld [vmem:[%s113_s0 + $0x4] sm:$0x1]   ;;  %v2_v4 = vld [vmem:[%s113_s0] sm:$0x1]   ;;  %s71_s18 = smov 96   ;;  %s72_s19 = smov 64  }
   0x3   :  { %4 = vst.msk [vmem:[#allocation0] sm:$0x1] %vm3_vm0, %v2_v4   ;;  %v59_v5 = vld [vmem:[%s113_s0 + $0x3] sm:$0x1]   ;;  %v60_v6 = vld [vmem:[%s113_s0 + $0x2] sm:$0x1]  }
   0x4   :  { %s73_s24 = smov 48   ;;  %s74_s25 = smov 32   ;;  %v61_v7 = vld [vmem:[%s113_s0 + $0x1] sm:$0x1]   ;;  %vm27_vm4 = vcmask 654848   ;;  %vm33_vm5 = vcmask 523648  }
   0x5   :  { %s75_s0 = smov 16   ;;  %vm39_vm6 = vcmask 392448   ;;  %vm45_vm7 = vcmask 261248  }
   0x6   :  { %13 = vrot.lane.b32.xlu0 %v56_v2, %s71_s18  ;;  %25 = vrot.lane.b32.xlu1 %v58_v3, %s72_s19 }
   0xa   :  { %31 = vrot.lane.b32.xlu0 %v59_v5, %s73_s24  ;;  %37 = vrot.lane.b32.xlu1 %v60_v6, %s74_s25 }
   0xe   :  { %43 = vrot.lane.b32.xlu0 %v61_v7, %s75_s0 }
  0x74   :  { %v8_v8 = vpop.permute.xlu0 %7   ;;  %v20_v9 = vpop.permute.xlu1 %19  }
  0x75   :  { %10 = vst.msk [vmem:[#allocation0] sm:$0x1] %vm9_vm1, %v8_v8  }
  0x78   :  { %v14_v10 = vpop.permute.xlu0 %13   ;;  %v26_v11 = vpop.permute.xlu1 %25  }
  0x79   :  { %16 = vst.msk [vmem:[#allocation0] sm:$0x1] %vm15_vm2, %v14_v10  }
  0x7a   :  { %22 = vst.msk [vmem:[#allocation0] sm:$0x1] %vm21_vm3, %v20_v9  }
  0x7b   :  { %28 = vst.msk [vmem:[#allocation0] sm:$0x1] %vm27_vm4, %v26_v11  }
  0x7c   :  { %v32_v12 = vpop.permute.xlu0 %31   ;;  %v38_v13 = vpop.permute.xlu1 %37  }
  0x7d   :  { %34 = vst.msk [vmem:[#allocation0] sm:$0x1] %vm33_vm5, %v32_v12  }
  0x7e   :  { %40 = vst.msk [vmem:[#allocation0] sm:$0x1] %vm39_vm6, %v38_v13  }
  0x80   :  { %v44_v14 = vpop.permute.xlu0 %43  }
  0x81   :  { %46 = vst.msk [vmem:[#allocation0] sm:$0x1] %vm45_vm7, %v44_v14  }
  0x88   :  { %v51_v15 = vld [vmem:[#allocation0] sm:$0x1] }
  0x89   :  { %54 = vst [vmem:[%s114_s1] sm:$0x1] %v51_v15 }

// kernel: imunet_forward.1
= control target key start
LH: loop header
LB: loop body
LE: loop exit
PB: predicated region body
PF: predicated region fallthrough
CT: control target
= control target key end

     0   :  { %v532_v3 = vmov 0.0   ;;  %vm91_vm0 = vcmask 785408   ;;  %s911_s1 = inlined_call_operand.vmem [shape: f32[96,512], index: 1, kind: input, shape index: {}]   ;;  %s912_s0 = inlined_call_operand.vmem [shape: f32[8,96], index: 0, kind: input, shape index: {}]   ;;  %s913_s3 = inlined_call_operand.vmem [shape: f32[512,128], index: 3, kind: input, shape index: {}]   ;;  %s914_s2 = inlined_call_operand.vmem [shape: f32[1,512], index: 2, kind: input, shape index: {}]   ;;  %s915_s4 = inlined_call_operand.vmem [shape: f32[1,128], index: 4, kind: input, shape index: {}]   ;;  %s916_s5 = inlined_call_operand.vmem [shape: f32[8,128], index: 5, kind: output, shape index: {}]  }
   0x1   :  { %v66_v0 = vld [vmem:[%s911_s1 + $0x168] sm:$0xff]  ;;  %v68_v1 = vld [vmem:[%s911_s1 + $0x178] sm:$0xff]  ;;  %v65_v2 = vld [vmem:[%s911_s1 + $0x160] sm:$0xff]  ;;  %159 = vmatprep.mubr.f32.mxu0 %v532_v3  ;;  %230 = vmatprep.mubr.f32.mxu1 %v532_v3 }
   0x2   :  { %103 = vmatprep.subr.mxu0 %v66_v0  ;;  %174 = vmatprep.subr.mxu1 %v68_v1  ;;  %v67_v4 = vld [vmem:[%s911_s1 + $0x170] sm:$0xff]  ;;  %v62_v5 = vld [vmem:[%s911_s1 + $0x148] sm:$0xff]  ;;  %v64_v6 = vld [vmem:[%s911_s1 + $0x158] sm:$0xff] }
   0x3   :  { %104 = vmatpush1.msra.mxu0 %v65_v2  ;;  %175 = vmatpush1.msra.mxu1 %v67_v4  ;;  %v61_v7 = vld [vmem:[%s911_s1 + $0x140] sm:$0xff]  ;;  %v63_v8 = vld [vmem:[%s911_s1 + $0x150] sm:$0xff]  ;;  %v58_v9 = vld [vmem:[%s911_s1 + $0x128] sm:$0xff] }
   0x4   :  { %105 = vmatprep.subr.mxu0 %v62_v5  ;;  %176 = vmatprep.subr.mxu1 %v64_v6  ;;  %v60_v10 = vld [vmem:[%s911_s1 + $0x138] sm:$0xff]  ;;  %v57_v11 = vld [vmem:[%s911_s1 + $0x120] sm:$0xff]  ;;  %v59_v12 = vld [vmem:[%s911_s1 + $0x130] sm:$0xff] }
   0x5   :  { %106 = vmatpush1.msra.mxu0 %v61_v7  ;;  %177 = vmatpush1.msra.mxu1 %v63_v8  ;;  %v54_v13 = vld [vmem:[%s911_s1 + $0x108] sm:$0xff]  ;;  %v56_v14 = vld [vmem:[%s911_s1 + $0x118] sm:$0xff]  ;;  %v53_v15 = vld [vmem:[%s911_s1 + $0x100] sm:$0xff] }
   0x6   :  { %107 = vmatprep.subr.mxu0 %v58_v9  ;;  %178 = vmatprep.subr.mxu1 %v60_v10  ;;  %v55_v16 = vld [vmem:[%s911_s1 + $0x110] sm:$0xff]  ;;  %v50_v17 = vld [vmem:[%s911_s1 + $0xe8] sm:$0xff]  ;;  %v52_v18 = vld [vmem:[%s911_s1 + $0xf8] sm:$0xff] }
   0x7   :  { %108 = vmatpush1.msra.mxu0 %v57_v11  ;;  %179 = vmatpush1.msra.mxu1 %v59_v12  ;;  %v49_v19 = vld [vmem:[%s911_s1 + $0xe0] sm:$0xff]  ;;  %v51_v20 = vld [vmem:[%s911_s1 + $0xf0] sm:$0xff]  ;;  %v46_v21 = vld [vmem:[%s911_s1 + $0xc8] sm:$0xff] }
   0x8   :  { %109 = vmatprep.subr.mxu0 %v54_v13  ;;  %180 = vmatprep.subr.mxu1 %v56_v14  ;;  %v48_v22 = vld [vmem:[%s911_s1 + $0xd8] sm:$0xff]  ;;  %v45_v23 = vld [vmem:[%s911_s1 + $0xc0] sm:$0xff]  ;;  %v47_v24 = vld [vmem:[%s911_s1 + $0xd0] sm:$0xff] }
   0x9   :  { %110 = vmatpush1.msra.mxu0 %v53_v15  ;;  %181 = vmatpush1.msra.mxu1 %v55_v16  ;;  %v42_v25 = vld [vmem:[%s911_s1 + $0xa8] sm:$0xff]  ;;  %v44_v26 = vld [vmem:[%s911_s1 + $0xb8] sm:$0xff]  ;;  %v41_v27 = vld [vmem:[%s911_s1 + $0xa0] sm:$0xff] }
   0xa   :  { %111 = vmatprep.subr.mxu0 %v50_v17  ;;  %182 = vmatprep.subr.mxu1 %v52_v18  ;;  %v43_v28 = vld [vmem:[%s911_s1 + $0xb0] sm:$0xff]  ;;  %v38_v29 = vld [vmem:[%s911_s1 + $0x88] sm:$0xff]  ;;  %v40_v30 = vld [vmem:[%s911_s1 + $0x98] sm:$0xff] }
   0xb   :  { %112 = vmatpush1.msra.mxu0 %v49_v19  ;;  %183 = vmatpush1.msra.mxu1 %v51_v20  ;;  %v37_v31 = vld [vmem:[%s911_s1 + $0x80] sm:$0xff]  ;;  %v39_v32 = vld [vmem:[%s911_s1 + $0x90] sm:$0xff]  ;;  %v34_v33 = vld [vmem:[%s911_s1 + $0x68] sm:$0xff] }
   0xc   :  { %113 = vmatprep.subr.mxu0 %v46_v21  ;;  %184 = vmatprep.subr.mxu1 %v48_v22  ;;  %v36_v34 = vld [vmem:[%s911_s1 + $0x78] sm:$0xff]  ;;  %v33_v35 = vld [vmem:[%s911_s1 + $0x60] sm:$0xff]  ;;  %v35_v36 = vld [vmem:[%s911_s1 + $0x70] sm:$0xff] }
   0xd   :  { %114 = vmatpush1.msra.mxu0 %v45_v23  ;;  %185 = vmatpush1.msra.mxu1 %v47_v24  ;;  %v30_v37 = vld [vmem:[%s911_s1 + $0x48] sm:$0xff]  ;;  %v32_v38 = vld [vmem:[%s911_s1 + $0x58] sm:$0xff]  ;;  %v29_v39 = vld [vmem:[%s911_s1 + $0x40] sm:$0xff] }
   0xe   :  { %115 = vmatprep.subr.mxu0 %v42_v25  ;;  %186 = vmatprep.subr.mxu1 %v44_v26  ;;  %v31_v40 = vld [vmem:[%s911_s1 + $0x50] sm:$0xff]  ;;  %v26_v41 = vld [vmem:[%s911_s1 + $0x28] sm:$0xff]  ;;  %v28_v42 = vld [vmem:[%s911_s1 + $0x38] sm:$0xff] }
   0xf   :  { %116 = vmatpush1.msra.mxu0 %v41_v27  ;;  %187 = vmatpush1.msra.mxu1 %v43_v28  ;;  %v25_v43 = vld [vmem:[%s911_s1 + $0x20] sm:$0xff]  ;;  %v27_v44 = vld [vmem:[%s911_s1 + $0x30] sm:$0xff]  ;;  %v22_v45 = vld [vmem:[%s911_s1 + $0x8] sm:$0xff] }
  0x10   :  { %117 = vmatprep.subr.mxu0 %v38_v29  ;;  %188 = vmatprep.subr.mxu1 %v40_v30  ;;  %v24_v46 = vld [vmem:[%s911_s1 + $0x18] sm:$0xff]  ;;  %v21_v47 = vld [vmem:[%s911_s1] sm:$0xff]  ;;  %v23_v48 = vld [vmem:[%s911_s1 + $0x10] sm:$0xff] }
  0x11   :  { %118 = vmatpush1.msra.mxu0 %v37_v31  ;;  %189 = vmatpush1.msra.mxu1 %v39_v32  ;;  %v20_v49 = vld [vmem:[%s912_s0] sm:$0xff]  ;;  %v272_v50 = vld [vmem:[%s913_s3 + $0xf8] sm:$0xff]  ;;  %v271_v54 = vld [vmem:[%s913_s3 + $0xf0] sm:$0xff] }
  0x12   :  { %119 = vmatprep.subr.mxu0 %v34_v33  ;;  %190 = vmatprep.subr.mxu1 %v36_v34  ;;  %v304_v51 = vld [vmem:[%s913_s3 + $0x1f8] sm:$0xff]  ;;  %v303_v55 = vld [vmem:[%s913_s3 + $0x1f0] sm:$0xff]  ;;  %v270_v58 = vld [vmem:[%s913_s3 + $0xe8] sm:$0xff] }
  0x13   :  { %120 = vmatpush1.msra.mxu0 %v33_v35  ;;  %191 = vmatpush1.msra.mxu1 %v35_v36  ;;  %v256_v52 = vld [vmem:[%s913_s3 + $0x78] sm:$0xff]  ;;  %v255_v56 = vld [vmem:[%s913_s3 + $0x70] sm:$0xff]  ;;  %v302_v59 = vld [vmem:[%s913_s3 + $0x1e8] sm:$0xff] }
  0x14   :  { %121 = vmatprep.subr.mxu0 %v30_v37  ;;  %192 = vmatprep.subr.mxu1 %v32_v38  ;;  %v288_v53 = vld [vmem:[%s913_s3 + $0x178] sm:$0xff]  ;;  %v287_v57 = vld [vmem:[%s913_s3 + $0x170] sm:$0xff]  ;;  %v254_v60 = vld [vmem:[%s913_s3 + $0x68] sm:$0xff] }
  0x15   :  { %122 = vmatpush1.msra.mxu0 %v29_v39  ;;  %193 = vmatpush1.msra.mxu1 %v31_v40  ;;  %v286_v61 = vld [vmem:[%s913_s3 + $0x168] sm:$0xff]  ;;  %v269_v62 = vld [vmem:[%s913_s3 + $0xe0] sm:$0xff]  ;;  %v268_v2 = vld [vmem:[%s913_s3 + $0xd8] sm:$0xff] }
  0x16   :  { %123 = vmatprep.subr.mxu0 %v26_v41  ;;  %194 = vmatprep.subr.mxu1 %v28_v42  ;;  %v301_v63 = vld [vmem:[%s913_s3 + $0x1e0] sm:$0xff]  ;;  %v300_v3 = vld [vmem:[%s913_s3 + $0x1d8] sm:$0xff]  ;;  %v267_v6 = vld [vmem:[%s913_s3 + $0xd0] sm:$0xff] }
  0x17   :  { %124 = vmatpush1.msra.mxu0 %v25_v43  ;;  %195 = vmatpush1.msra.mxu1 %v27_v44  ;;  %v253_v0 = vld [vmem:[%s913_s3 + $0x60] sm:$0xff]  ;;  %v252_v4 = vld [vmem:[%s913_s3 + $0x58] sm:$0xff]  ;;  %v299_v7 = vld [vmem:[%s913_s3 + $0x1d0] sm:$0xff] }
  0x18   :  { %125 = vmatprep.subr.mxu0 %v22_v45  ;;  %196 = vmatprep.subr.mxu1 %v24_v46  ;;  %v285_v1 = vld [vmem:[%s913_s3 + $0x160] sm:$0xff]  ;;  %v284_v5 = vld [vmem:[%s913_s3 + $0x158] sm:$0xff]  ;;  %v251_v8 = vld [vmem:[%s913_s3 + $0x50] sm:$0xff] }
  0x19   :  { %126 = vmatpush1.msra.mxu0 %v21_v47  ;;  %197 = vmatpush1.msra.mxu1 %v23_v48  ;;  %v283_v9 = vld [vmem:[%s913_s3 + $0x150] sm:$0xff]  ;;  %v266_v10 = vld [vmem:[%s913_s3 + $0xc8] sm:$0xff]  ;;  %v265_v14 = vld [vmem:[%s913_s3 + $0xc0] sm:$0xff] }
  0x1a   :  { %458 = vmatmul.mubr.msk.f32.vlgmr.msra.gmra.mxu0 %vm91_vm0, %v20_v49  ;;  %459 = vmatmul.mubr.msk.f32.vlgmr.msra.gmra.mxu1 %vm91_vm0, %v20_v49  ;;  %v298_v11 = vld [vmem:[%s913_s3 + $0x1c8] sm:$0xff]  ;;  %v297_v15 = vld [vmem:[%s913_s3 + $0x1c0] sm:$0xff]  ;;  %v264_v18 = vld [vmem:[%s913_s3 + $0xb8] sm:$0xff] }
  0x1b   :  { %461 = vmatprep.subr.mxu0 %v272_v50  ;;  %496 = vmatprep.subr.mxu1 %v304_v51  ;;  %v250_v12 = vld [vmem:[%s913_s3 + $0x48] sm:$0xff]  ;;  %v249_v16 = vld [vmem:[%s913_s3 + $0x40] sm:$0xff]  ;;  %v296_v19 = vld [vmem:[%s913_s3 + $0x1b8] sm:$0xff]  ;;  %v71_v50 = vlaneseq }
  0x1c   :  { %462 = vmatpush3.msra.mxu0 %v256_v52  ;;  %497 = vmatpush3.msra.mxu1 %v288_v53  ;;  %v282_v13 = vld [vmem:[%s913_s3 + $0x148] sm:$0xff]  ;;  %v281_v17 = vld [vmem:[%s913_s3 + $0x140] sm:$0xff]  ;;  %v248_v20 = vld [vmem:[%s913_s3 + $0x38] sm:$0xff] }
  0x1d   :  { %463 = vmatprep.subr.mxu0 %v271_v54  ;;  %498 = vmatprep.subr.mxu1 %v303_v55  ;;  %v280_v21 = vld [vmem:[%s913_s3 + $0x138] sm:$0xff]  ;;  %v263_v22 = vld [vmem:[%s913_s3 + $0xb0] sm:$0xff]  ;;  %v262_v26 = vld [vmem:[%s913_s3 + $0xa8] sm:$0xff]  ;;  %v72_v51 = vshrl.u32 %v71_v50, 7 }
  0x1e   :  { %464 = vmatpush3.msra.mxu0 %v255_v56  ;;  %499 = vmatpush3.msra.mxu1 %v287_v57  ;;  %v295_v23 = vld [vmem:[%s913_s3 + $0x1b0] sm:$0xff]  ;;  %v294_v27 = vld [vmem:[%s913_s3 + $0x1a8] sm:$0xff]  ;;  %v261_v30 = vld [vmem:[%s913_s3 + $0xa0] sm:$0xff] }
  0x1f   :  { %465 = vmatprep.subr.mxu0 %v270_v58  ;;  %500 = vmatprep.subr.mxu1 %v302_v59  ;;  %v247_v24 = vld [vmem:[%s913_s3 + $0x30] sm:$0xff]  ;;  %v246_v28 = vld [vmem:[%s913_s3 + $0x28] sm:$0xff]  ;;  %v293_v31 = vld [vmem:[%s913_s3 + $0x1a0] sm:$0xff]  ;;  %v81_v52 = vsub.s32 2, %v72_v51  ;;  %v73_v53 = vsub.s32 0, %v72_v51  ;;  %v77_v55 = vsub.s32 1, %v72_v51 }
  0x20   :  { %466 = vmatpush3.msra.mxu0 %v254_v60  ;;  %501 = vmatpush3.msra.mxu1 %v286_v61  ;;  %v279_v25 = vld [vmem:[%s913_s3 + $0x130] sm:$0xff]  ;;  %v278_v29 = vld [vmem:[%s913_s3 + $0x128] sm:$0xff]  ;;  %v245_v32 = vld [vmem:[%s913_s3 + $0x20] sm:$0xff]  ;;  %v85_v56 = vsub.s32 3, %v72_v51 }
  0x21   :  { %467 = vmatprep.subr.mxu0 %v269_v62  ;;  %502 = vmatprep.subr.mxu1 %v301_v63  ;;  %v277_v33 = vld [vmem:[%s913_s3 + $0x120] sm:$0xff]  ;;  %v260_v34 = vld [vmem:[%s913_s3 + $0x98] sm:$0xff]  ;;  %v259_v38 = vld [vmem:[%s913_s3 + $0x90] sm:$0xff] }
  0x22   :  { %468 = vmatpush3.msra.mxu0 %v253_v0  ;;  %503 = vmatpush3.msra.mxu1 %v285_v1  ;;  %v292_v35 = vld [vmem:[%s913_s3 + $0x198] sm:$0xff]  ;;  %v291_v39 = vld [vmem:[%s913_s3 + $0x190] sm:$0xff]  ;;  %v258_v42 = vld [vmem:[%s913_s3 + $0x88] sm:$0xff] }
  0x23   :  { %469 = vmatprep.subr.mxu0 %v268_v2  ;;  %504 = vmatprep.subr.mxu1 %v300_v3  ;;  %v244_v36 = vld [vmem:[%s913_s3 + $0x18] sm:$0xff]  ;;  %v243_v40 = vld [vmem:[%s913_s3 + $0x10] sm:$0xff]  ;;  %v290_v43 = vld [vmem:[%s913_s3 + $0x188] sm:$0xff] }
  0x24   :  { %470 = vmatpush3.msra.mxu0 %v252_v4  ;;  %505 = vmatpush3.msra.mxu1 %v284_v5  ;;  %v276_v37 = vld [vmem:[%s913_s3 + $0x118] sm:$0xff]  ;;  %v275_v41 = vld [vmem:[%s913_s3 + $0x110] sm:$0xff]  ;;  %v242_v44 = vld [vmem:[%s913_s3 + $0x8] sm:$0xff] }
  0x25   :  { %471 = vmatprep.subr.mxu0 %v267_v6  ;;  %506 = vmatprep.subr.mxu1 %v299_v7  ;;  %v274_v45 = vld [vmem:[%s913_s3 + $0x108] sm:$0xff]  ;;  %v257_v46 = vld [vmem:[%s913_s3 + $0x80] sm:$0xff] }
  0x26   :  { %472 = vmatpush3.msra.mxu0 %v251_v8  ;;  %507 = vmatpush3.msra.mxu1 %v283_v9  ;;  %v289_v47 = vld [vmem:[%s913_s3 + $0x180] sm:$0xff] }
  0x27   :  { %473 = vmatprep.subr.mxu0 %v266_v10  ;;  %508 = vmatprep.subr.mxu1 %v298_v11  ;;  %v241_v48 = vld [vmem:[%s913_s3] sm:$0xff] }
  0x28   :  { %474 = vmatpush3.msra.mxu0 %v250_v12  ;;  %509 = vmatpush3.msra.mxu1 %v282_v13  ;;  %v273_v49 = vld [vmem:[%s913_s3 + $0x100] sm:$0xff] }
  0x29   :  { %475 = vmatprep.subr.mxu0 %v265_v14  ;;  %510 = vmatprep.subr.mxu1 %v297_v15  ;;  %v69_v54 = vld [vmem:[%s914_s2] sm:$0xf] }
  0x2a   :  { %476 = vmatpush3.msra.mxu0 %v249_v16  ;;  %511 = vmatpush3.msra.mxu1 %v281_v17  ;;  %v82_v57 = vrot.slane %v69_v54, %v81_v52  ;;  %v74_v58 = vrot.slane %v69_v54, %v73_v53  ;;  %v78_v59 = vrot.slane %v69_v54, %v77_v55  ;;  %v460_v11 = vld [vmem:[%s915_s4] ss:$0 sm:$0xff] }
  0x2b   :  { %477 = vmatprep.subr.mxu0 %v264_v18  ;;  %512 = vmatprep.subr.mxu1 %v296_v19  ;;  %v86_v60 = vrot.slane %v69_v54, %v85_v56 }
  0x2c   :  { %478 = vmatpush3.msra.mxu0 %v248_v20  ;;  %513 = vmatpush3.msra.mxu1 %v280_v21 }
  0x2d   :  { %479 = vmatprep.subr.mxu0 %v263_v22  ;;  %514 = vmatprep.subr.mxu1 %v295_v23 }
  0x2e   :  { %480 = vmatpush3.msra.mxu0 %v247_v24  ;;  %515 = vmatpush3.msra.mxu1 %v279_v25 }
  0x2f   :  { %481 = vmatprep.subr.mxu0 %v262_v26  ;;  %516 = vmatprep.subr.mxu1 %v294_v27 }
  0x30   :  { %482 = vmatpush3.msra.mxu0 %v246_v28  ;;  %517 = vmatpush3.msra.mxu1 %v278_v29 }
  0x31   :  { %483 = vmatprep.subr.mxu0 %v261_v30  ;;  %518 = vmatprep.subr.mxu1 %v293_v31 }
  0x32   :  { %484 = vmatpush3.msra.mxu0 %v245_v32  ;;  %519 = vmatpush3.msra.mxu1 %v277_v33 }
  0x33   :  { %485 = vmatprep.subr.mxu0 %v260_v34  ;;  %520 = vmatprep.subr.mxu1 %v292_v35 }
  0x34   :  { %486 = vmatpush3.msra.mxu0 %v244_v36  ;;  %521 = vmatpush3.msra.mxu1 %v276_v37 }
  0x35   :  { %487 = vmatprep.subr.mxu0 %v259_v38  ;;  %522 = vmatprep.subr.mxu1 %v291_v39 }
  0x36   :  { %488 = vmatpush3.msra.mxu0 %v243_v40  ;;  %523 = vmatpush3.msra.mxu1 %v275_v41 }
  0x37   :  { %489 = vmatprep.subr.mxu0 %v258_v42  ;;  %524 = vmatprep.subr.mxu1 %v290_v43 }
  0x38   :  { %490 = vmatpush3.msra.mxu0 %v242_v44  ;;  %525 = vmatpush3.msra.mxu1 %v274_v45 }
  0x39   :  { %491 = vmatprep.subr.mxu0 %v257_v46  ;;  %526 = vmatprep.subr.mxu1 %v289_v47 }
  0x3a   :  { %492 = vmatpush3.msra.mxu0 %v241_v48  ;;  %527 = vmatpush3.msra.mxu1 %v273_v49 }
  0xda   :  { %v161_v61 = vpop.f32.mrf.mxu0  ;;  %v232_v62 = vpop.f32.mrf.mxu1 }
  0xdb   :  { %v233_v63 = vadd.f32 %v232_v62, %v82_v57  ;;  %v162_v0 = vadd.f32 %v161_v61, %v74_v58 }
  0xdc   :  { %v163_v1 = vpop.f32.mrf.mxu0  ;;  %v234_v2 = vpop.f32.mrf.mxu1 }
  0xdd   :  { %v164_v3 = vadd.f32 %v163_v1, %v78_v59  ;;  %v235_v4 = vadd.f32 %v234_v2, %v86_v60  ;;  %v239_v5 = vmax.f32 %v233_v63, 0.0  ;;  %v237_v8 = vmax.f32 %v162_v0, 0.0 }
  0xdf   :  { %v238_v6 = vmax.f32 %v164_v3, 0.0  ;;  %v240_v7 = vmax.f32 %v235_v4, 0.0 }
  0xe1   :  { %376 = vmatprep.mubr.f32.mxu0 %v238_v6  ;;  %446 = vmatprep.mubr.f32.mxu1 %v240_v7 }
  0xe2   :  { %377 = vmatmul.mubr.f32.vlgmr.msra.gmra.mxu0 %v237_v8  ;;  %447 = vmatmul.mubr.f32.vlgmr.msra.gmra.mxu1 %v239_v5 }
 0x1a2   :  { %v493_v9 = vpop.f32.mrf.mxu0  ;;  %v528_v10 = vpop.f32.mrf.mxu1 }
 0x1a4   :  { %v494_v12 = vpop.f32.mrf.mxu0  ;;  %v529_v13 = vpop.f32.mrf.mxu1 }
 0x1a5   :  { %v495_v14 = vadd.f32 %v494_v12, %v493_v9  ;;  %v530_v16 = vadd.f32 %v529_v13, %v528_v10 }
 0x1a7   :  { %v379_v15 = vadd.f32 %v495_v14, %v460_v11 }
 0x1a9   :  { %v449_v17 = vadd.f32 %v530_v16, %v379_v15 }
 0x1ab   :  { %v452_v18 = vmax.f32 %v449_v17, 0.0 }
 0x1ad   :  { %453 = vst [vmem:[%s916_s5] sm:$0xff] %v452_v18 }

</bundles_post_ra>
